<compile_context>
chip_gen: v7x
topology: tpu7x:2x2x1
jax: 0.10.0
libtpu: 0.0.40
codegen_flags: <defaults>
</compile_context>

<pallas_src>
import functools

import jax
import jax.numpy as jnp
from jax.experimental import pallas as pl
from jax.experimental.pallas import tpu as pltpu


def _self_attention_kernel(x_ref, o_ref, *, C, tq, tk, n_q, n_k, bf16_probs):
    f32 = jnp.float32

    def pv_matmul(xk, p):
        # out[c, i] = sum_j xk[c, j] * p[j, i]  -> (C, tq).  Contract the key
        # axis of both operands: the probability matrix is never transposed.
        if bf16_probs:
            xk = xk.astype(jnp.bfloat16)
            p = p.astype(jnp.bfloat16)
        return jax.lax.dot_general(xk, p, (((1,), (0,)), ((), ())),
                                   preferred_element_type=f32)

    # ---- Query tile: sliced from the VMEM-resident slab (single HBM stream).
    if n_q == 1:
        xq = x_ref[0].astype(f32)                               # (C, N)
    else:
        q_start = pl.multiple_of(pl.program_id(1) * tq, 128)
        xq = x_ref[0, :, pl.ds(q_start, tq)].astype(f32)        # (C, tq)

    def load_keys(k_idx):
        if n_k == 1:
            return x_ref[0].astype(f32)                         # (C, N)
        k_start = pl.multiple_of(k_idx * tk, 128)
        return x_ref[0, :, pl.ds(k_start, tk)].astype(f32)      # (C, tk)

    def energy(xk):
        # e[j, i] = sum_c xk[c, j] * xq[c, i]  -> (tk, tq): queries land on
        # lanes, so the softmax stats / output are already lane-major and no
        # transpose is ever needed.
        return jax.lax.dot_general(xk, xq, (((0,), (0,)), ((), ())),
                                   preferred_element_type=f32)

    if n_k == 1:
        # Single key chunk: plain numerically-stable softmax, normalization
        # deferred to one reciprocal + broadcast multiply.
        xk = load_keys(0)
        e = energy(xk)                                          # (N, tq)
        m = jnp.max(e, axis=0, keepdims=True)                   # (1, tq)
        p = jnp.exp(e - m)                                      # (N, tq)
        l = jnp.sum(p, axis=0, keepdims=True)                   # (1, tq)
        acc = pv_matmul(xk, p)                                  # (C, tq)
    else:
        # Flash-style online softmax over key chunks: hot temporaries are
        # bounded to (tk, tq) so VMEM stays O(TQ*TK) even for large N.
        def body(k_idx, carry):
            m_old, l_old, acc_old = carry
            xk = load_keys(k_idx)
            e = energy(xk)                                      # (tk, tq)
            m_new = jnp.maximum(m_old, jnp.max(e, axis=0, keepdims=True))
            alpha = jnp.exp(m_old - m_new)                      # (1, tq)
            p = jnp.exp(e - m_new)                              # (tk, tq)
            l_new = l_old * alpha + jnp.sum(p, axis=0, keepdims=True)
            acc_new = acc_old * alpha + pv_matmul(xk, p)
            return m_new, l_new, acc_new

        width = xq.shape[1]
        m0 = jnp.full((1, width), -jnp.inf, f32)
        l0 = jnp.zeros((1, width), f32)
        acc0 = jnp.zeros((C, width), f32)
        _, l, acc = jax.lax.fori_loop(0, n_k, body, (m0, l0, acc0))

    # Deferred normalization (one (1, tq) reciprocal + broadcast multiply, no
    # (tk, tq) divide), residual add, lane-dense store of exactly C rows.
    inv_l = pl.reciprocal(l, approx=False)
    o_ref[0] = (acc * inv_l + xq).astype(o_ref.dtype)


def _vmem_capacity_bytes():
    """Physical per-core VMEM; conservative fallback is v7x's 64 MiB/TC."""
    try:
        return int(pltpu.get_tpu_info().vmem_capacity_bytes)
    except Exception:
        return 64 << 20


def _footprint_bytes(C, N, tq, tk):
    """Rough per-step VMEM footprint in f32 (2x slack on the live temporaries)."""
    itm = 4
    slab = 2 * C * N * itm                         # double-buffered x slab
    outb = 2 * C * tq * itm                        # double-buffered output tile
    temps = (2 * tk * tq + 2 * C * tq + C * tk + 4 * tq) * itm
    return slab + outb + 2 * temps


def _pick_tiles(C, N, budget):
    """Largest lane-aligned query tile / key chunk whose footprint fits."""
    tq_cands = [t for t in (512, 256, 128) if N % t == 0] or [N]
    tk_cands = [t for t in (2048, 1024, 512, 256, 128) if N % t == 0] or [N]
    # Prefer >=2 query tiles (keeps both v7x TensorCores busy even at B=1),
    # then the largest query tile, then the largest key chunk that fits.
    for require_multi in (True, False):
        for tq in tq_cands:
            if require_multi and N // tq < 2:
                continue
            for tk in tk_cands:
                if _footprint_bytes(C, N, tq, tk) <= budget:
                    return tq, tk
    return tq_cands[-1], tk_cands[-1]


def self_attention(x, *, tile_q=None, tile_k=None, bf16_probs=False):
    """Parameter-free spatial self-attention.  x: (B, C, H, W) (NCHW)."""
    B, C, H, W = x.shape
    N = H * W
    x_flat = x.reshape(B, C, N)                    # free view, no host pad copy

    cap = _vmem_capacity_bytes()
    budget = max(cap - (16 << 20), 16 << 20)       # leave compiler-scratch headroom
    tq, tk = _pick_tiles(C, N, budget)
    if tile_q is not None:
        tq = tile_q
    if tile_k is not None:
        tk = tile_k
    assert N % tq == 0 and N % tk == 0
    n_q, n_k = N // tq, N // tk
    # The in-kernel pl.ds starts are asserted 128-aligned via pl.multiple_of.
    assert tq % 128 == 0 or n_q == 1
    assert tk % 128 == 0 or n_k == 1

    fp = _footprint_bytes(C, N, tq, tk)
    vmem_limit = int(min(max(fp, 32 << 20), cap - (8 << 20)))

    kernel = functools.partial(_self_attention_kernel, C=C, tq=tq, tk=tk,
                               n_q=n_q, n_k=n_k, bf16_probs=bf16_probs)

    out = pl.pallas_call(
        kernel,
        out_shape=jax.ShapeDtypeStruct((B, C, N), x.dtype),
        grid_spec=pltpu.PrefetchScalarGridSpec(
            num_scalar_prefetch=0,
            # Query-tile axis is innermost; the slab's block index depends only
            # on b, so x is DMA'd from HBM once per batch element.
            grid=(B, n_q),
            in_specs=[
                pl.BlockSpec((1, C, N), lambda b, q: (b, 0, 0)),   # x slab
            ],
            out_specs=pl.BlockSpec((1, C, tq), lambda b, q: (b, 0, q)),
        ),
        compiler_params=pltpu.CompilerParams(
            dimension_semantics=("parallel", "parallel"),
            vmem_limit_bytes=vmem_limit,
        ),
    )(x_flat)

    return out.reshape(B, C, H, W)


def _reference(x):
    """Pure-JAX reference of the same parameter-free self-attention."""
    B, C, H, W = x.shape
    N = H * W
    xf = x.reshape(B, C, N).astype(jnp.float32)
    energy = jnp.einsum("bci,bcj->bij", xf, xf,
                        precision=jax.lax.Precision.HIGHEST)   # (B, N, N)
    attn = jax.nn.softmax(energy, axis=-1)
    out = jnp.einsum("bcj,bij->bci", xf, attn,
                     precision=jax.lax.Precision.HIGHEST) + xf
    return out.reshape(B, C, H, W).astype(x.dtype)


if __name__ == "__main__":
    key = jax.random.PRNGKey(0)
    k1, k2 = jax.random.split(key)

    # Main check: auto-tiled path (query-tile slicing, single key chunk).
    x = jax.random.normal(k1, (2, 4, 16, 16), dtype=jnp.float32)
    y = jax.block_until_ready(self_attention(x))
    y_ref = _reference(x)
    assert y.shape == x.shape
    assert jnp.allclose(y, y_ref, atol=1e-4, rtol=1e-4), \
        float(jnp.max(jnp.abs(y - y_ref)))

    # Also exercise the flash-style key-chunked online-softmax path.
    x2 = jax.random.normal(k2, (1, 3, 16, 32), dtype=jnp.float32)
    y2 = jax.block_until_ready(self_attention(x2, tile_q=128, tile_k=128))
    y2_ref = _reference(x2)
    assert jnp.allclose(y2, y2_ref, atol=1e-4, rtol=1e-4), \
        float(jnp.max(jnp.abs(y2 - y2_ref)))

    print("KERNEL_OK")
</pallas_src>

<mosaic_0001>
module attributes {stable_mosaic.version = 11 : i64} {
  func.func @_self_attention_kernel(%arg0: i32, %arg1: i32, %arg2: memref<1x4x256xf32, #tpu.memory_space<vmem>>, %arg3: memref<1x4x128xf32, #tpu.memory_space<vmem>>) attributes {dimension_semantics = [#tpu.dimension_semantics<parallel>, #tpu.dimension_semantics<parallel>], iteration_bounds = array<i64: 2, 2>, scalar_prefetch = 0 : i64, scratch_operands = 0 : i64, tpu.core_type = #tpu.core_type<tc>, window_params = [{transform_indices = @transform_0, window_bounds = array<i64: 1, 4, 256>}, {transform_indices = @transform_1, window_bounds = array<i64: 1, 4, 128>}]} {
    %c128_i32 = arith.constant 128 : i32
    %0 = arith.muli %arg1, %c128_i32 : i32
    %1 = tpu.assume_multiple %0, 128 : i32
    %c0 = arith.constant 0 : index
    %c0_0 = arith.constant 0 : index
    %2 = arith.index_cast %1 : i32 to index
    %3 = vector.load %arg2[%c0, %c0_0, %2] : memref<1x4x256xf32, #tpu.memory_space<vmem>>, vector<1x4x128xf32>
    %4 = vector.shape_cast %3 : vector<1x4x128xf32> to vector<4x128xf32>
    %c0_1 = arith.constant 0 : index
    %c0_2 = arith.constant 0 : index
    %c0_3 = arith.constant 0 : index
    %5 = vector.load %arg2[%c0_1, %c0_2, %c0_3] : memref<1x4x256xf32, #tpu.memory_space<vmem>>, vector<1x4x256xf32>
    %6 = vector.shape_cast %5 : vector<1x4x256xf32> to vector<4x256xf32>
    %cst = arith.constant dense<0.000000e+00> : vector<256x128xf32>
    %7 = tpu.matmul %6, %4, %cst {dimension_numbers = #tpu.dot_dimension_numbers<[0], [0], [1], [1], [0, 1, 1, 1], [], []>} : vector<4x256xf32>, vector<4x128xf32>, vector<256x128xf32> -> vector<256x128xf32>
    %cst_4 = arith.constant dense<0xFF800000> : vector<128xf32>
    %8 = vector.multi_reduction <maximumf>, %7, %cst_4 [0] : vector<256x128xf32> to vector<128xf32>
    %9 = vector.shape_cast %8 : vector<128xf32> to vector<1x128xf32>
    %10 = vector.broadcast %9 : vector<1x128xf32> to vector<256x128xf32>
    %11 = arith.subf %7, %10 : vector<256x128xf32>
    %12 = math.exp %11 : vector<256x128xf32>
    %cst_5 = arith.constant dense<0.000000e+00> : vector<128xf32>
    %13 = vector.multi_reduction <add>, %12, %cst_5 [0] : vector<256x128xf32> to vector<128xf32>
    %14 = vector.shape_cast %13 : vector<128xf32> to vector<1x128xf32>
    %cst_6 = arith.constant dense<0.000000e+00> : vector<4x128xf32>
    %15 = tpu.matmul %6, %12, %cst_6 {dimension_numbers = #tpu.dot_dimension_numbers<[1], [0], [0], [1], [0, 0, 1, 1], [], []>} : vector<4x256xf32>, vector<256x128xf32>, vector<4x128xf32> -> vector<4x128xf32>
    %16 = tpu.reciprocal %14 : vector<1x128xf32> -> vector<1x128xf32>
    %17 = vector.broadcast %16 : vector<1x128xf32> to vector<4x128xf32>
    %18 = arith.mulf %15, %17 : vector<4x128xf32>
    %19 = arith.addf %18, %4 : vector<4x128xf32>
    %c0_7 = arith.constant 0 : index
    %c0_8 = arith.constant 0 : index
    %c0_9 = arith.constant 0 : index
    %20 = vector.load %arg3[%c0_7, %c0_8, %c0_9] : memref<1x4x128xf32, #tpu.memory_space<vmem>>, vector<1x4x128xf32>
    %21 = vector.shape_cast %20 : vector<1x4x128xf32> to vector<4x128xf32>
    %22 = vector.shape_cast %19 : vector<4x128xf32> to vector<1x4x128xf32>
    tpu.vector_store %arg3[%c0_7, %c0_8, %c0_9], %22 {strides = array<i32>} : memref<1x4x128xf32, #tpu.memory_space<vmem>>, vector<1x4x128xf32>,
    return
  }
  func.func @transform_0(%arg0: i32, %arg1: i32) -> (i32, i32, i32) {
    %c0_i32 = arith.constant 0 : i32
    %c0_i32_0 = arith.constant 0 : i32
    %c0_i32_1 = arith.constant 0 : i32
    return %arg0, %c0_i32, %c0_i32_0 : i32, i32, i32
  }
  func.func @transform_1(%arg0: i32, %arg1: i32) -> (i32, i32, i32) {
    %c0_i32 = arith.constant 0 : i32
    %c0_i32_0 = arith.constant 0 : i32
    return %arg0, %c0_i32, %arg1 : i32, i32, i32
  }
}

</mosaic_0001>

<bundles_post_ra>
// kernel: tpu_custom_call.1
= control target key start
LH: loop header
LB: loop body
LE: loop exit
PB: predicated region body
PF: predicated region fallthrough
CT: control target
= control target key end

     0   :  { %6 = vsyncpa [#allocation3], 0  ;;  %s1971_s0 = inlined_call_operand.hbm [shape: f32[2,4,256], index: 0, kind: input, shape index: {}]   ;;  %s1972_s1 = inlined_call_operand.hbm [shape: f32[2,4,256], index: 1, kind: output, shape index: {}]  }
   0x1   :  { %8 = vsyncpa [#allocation3 + $0x1], 0 }
   0x2   :  { %9 = vsyncpa [#allocation4], 0 }
   0x3   :  { %11 = vsyncpa [#allocation4 + $0x1], 0  ;;  %s1429_s6 = smov 0   ;;  %s1431_s7 = smov 0  }
   0x4   :  { %s1433_s8 = smov 0   ;;  %s1435_s9 = smov 0  }
   0x5   :  { %s1437_s10 = smov 0   ;;  %s1439_s11 = smov 0  }
   0x6   :  { %s1441_s12 = smov 0   ;;  %s1443_s13 = smov 0  }
   0x7   :  { %s1445_s14 = smov 0   ;;  %s1447_s15 = smov 0  }
   0x8   :  { %s1449_s16 = smov 0  }
   0x9 LB: > { %s892_s17 = sadd.s32 4294967295, %s1415_s16   ;;  %s893_s18 = sadd.s32 4294967294, %s1415_s16   ;;  %s1415_s16 = sphi %s1449_s16, %s17_s16   ;;  %s1411_s15 = sphi %s1447_s15, %s1992_s15   ;;  %s1407_s14 = sphi %s1445_s14, %s1991_s14   ;;  %s1403_s13 = sphi %s1443_s13, %s1990_s13   ;;  %s1399_s12 = sphi %s1441_s12, %s1989_s12   ;;  %s1395_s11 = sphi %s1439_s11, %s1988_s11   ;;  %s1391_s10 = sphi %s1437_s10, %s1987_s10   ;;  %s1387_s9 = sphi %s1435_s9, %s1986_s9   ;;  %s1383_s8 = sphi %s1433_s8, %s1985_s8   ;;  %s1379_s7 = sphi %s1431_s7, %s1984_s7   ;;  %s1375_s6 = sphi %s1429_s6, %s1983_s6  }
   0xa   : > { %s26_s19 = sadd.s32 1, %s1407_s14  ;;  %s29_s20 = sadd.s32 1, %s1411_s15 }
   0xb   : > { %p27_p0 = scmp.ge.s32.totalorder %s26_s19, 2  ;;  %s36_s21 = sadd.s32 1, %s1395_s11 }
   0xc   : > { %p43_p1 = scmp.ne.s32.totalorder %s1395_s11, %s1391_s10  ;;  %p44_p2 = scmp.eq.s32.totalorder %s1415_s16, 0 }
   0xd   : > { %s1994_s19 = smov (%p27_p0, %s26_s19), 0  ;;  %s1996_s20 = smov (!%p27_p0, %s29_s20), %s1411_s15 }
   0xe   : > { %p1493_p3 = por %p44_p2, %p43_p1  ;;  %p49_p4 = scmp.ne.s32.totalorder %s1391_s10, %s1387_s9 }
   0xf   : > { %p31_p5 = scmp.ge.s32.totalorder %s1996_s20, 2  ;;  %p50_p6 = scmp.eq.s32.totalorder %s892_s17, 0 }
  0x10   : > { %s60_s23 = ssub.s32 %s1407_s14, %s1994_s19  ;;  %s64_s24 = sadd.s32 1, %s1383_s8 }
  0x11   : > { %s1998_s20 = smov (%p31_p5, %s1996_s20), 0  ;;  %p1503_p7 = por %p50_p6, %p49_p4 }
  0x12   : > { %p74_p8 = scmp.ne.s32.totalorder %s1383_s8, %s1379_s7  ;;  %s33_s26 = ssub.s32 %s1411_s15, %s1998_s20 }
  0x13   : > { %p75_p9 = scmp.eq.s32.totalorder %s892_s17, 3  ;;  %p34_p10 = scmp.eq.s32.totalorder %s33_s26, 0 }
  0x14   : > { %s61_s27 = sor.u32 %s60_s23, %s33_s26  ;;  %p80_p13 = scmp.ne.s32.totalorder %s1379_s7, %s1375_s6 }
  0x15   : > { %p62_p11 = scmp.eq.s32.totalorder %s61_s27, 0  ;;  %p1511_p12 = por %p75_p9, %p74_p8 }
  0x16   : > { %s1516_s29 = scalar_select %p34_p10, %s1395_s11, %s36_s21  }
  0x17   : > { %s1976_s28 = scalar_select %p1511_p12, 1, 0 }
  0x18   : > { %s1519_s30 = scalar_select %p62_p11, %s1383_s8, %s64_s24  }
  0x19   : > { %p81_p0 = scmp.eq.s32.totalorder %s893_s18, 3  ;;  %p1105_p1 = scmp.lt.s32.totalorder %s1415_s16, 4 }
  0x1a   : > { %s101_s3 = sand.u32 1, %s1395_s11   ;;  %s942_s5 = sshll.u32 %s1411_s15, 7 }
  0x1b   : > { %p1524_p2 = por %p81_p0, %p80_p13  ;;  %s896_s4 = sshll.u32 %s101_s3, 3 }
  0x1c   : > { %s1533_s23 = scalar_lea.hbm %s1971_s0, %s942_s5  ;;  %s105_s21 = scalar_lea.vmem [#allocation2], %s896_s4 }
  0x1d   : > { %s1977_s2 = scalar_select %p1524_p2, 1, 0 }
  0x1e   : > { %s113_s24 = sshll.u32 %s105_s21, 4  ;;  %p1539_p4 = pnand %p1105_p1, %p1493_p3  ;;  %s1535_s24 = int_to_ptr.vmem [resolvable:$true] %s113_s24 }
  0x1f   : > { %s102_s26 = scalar_lea.sflag [#allocation3], %s101_s3  ;;  %s1263_s27 = scalar_lea.hbm %s1533_s23, 128 }
  0x20   : > { %p1264_p8 = scmp.ne.s32.totalorder %s1533_s23, %s1263_s27  ;;  %p1265_p9 = pneg %p1539_p4 }
  0x21   : > { %s1268_s22 = scalar_lea.hbm %s1971_s0, 256  ;;  %p1269_p3 = scmp.lt.u32.totalorder %s1533_s23, %s1971_s0 }
  0x22   : > { %p1266_p10 = pnand %p1265_p9, %p1264_p8  ;;  %p1270_p13 = scmp.lt.u32.totalorder %s1268_s22, %s1263_s27 }
  0x23   : > { %p1272_p1 = scmp.lt.u32.totalorder %s1263_s27, %s1533_s23 }
  0x24   : > { %p1267_p11 = pneg %p1266_p10  ;;  %p1271_p0 = por %p1270_p13, %p1269_p3 }
  0x26   : > { %p1273_p5 = por %p1272_p1, %p1271_p0 }
  0x28   : > { %p1274_p6 = pnand %p1273_p5, %p1267_p11 }
  0x2a   : > { %1277 = shalt.err (!%p1274_p6)
}
  0x2b   : > { %s1278_s3 = scalar_lea.vmem %s1535_s24, 128  ;;  %s1417_s21 = smov [#allocation2]  }
  0x2c   : > { %p1279_p8 = scmp.ne.s32.totalorder %s1535_s24, %s1278_s3  ;;  %s1283_s4 = sshll.u32 %s1417_s21, 4  ;;  %s1284_s4 = int_to_ptr.vmem [resolvable:$false] %s1283_s4 }
  0x2d   : > { %s1285_s5 = scalar_lea.vmem %s1284_s4, 256  ;;  %p1286_p12 = scmp.lt.s32.totalorder %s1535_s24, %s1284_s4 }
  0x2e   : > { %p1281_p10 = pnand %p1279_p8, %p1265_p9  ;;  %p1287_p3 = scmp.lt.s32.totalorder %s1285_s5, %s1278_s3 }
  0x30   : > { %p1282_p2 = pneg %p1281_p10  ;;  %p1288_p13 = por %p1287_p3, %p1286_p12 }
  0x32   : > { %p1289_p0 = pnand %p1288_p13, %p1282_p2 }
  0x34   : > { %1292 = shalt.err (!%p1289_p0)
}
  0x35   : > { %1100 = dma.hbm_to_vmem [thread:$0]  (!%p1539_p4), %s1533_s23, 128, %s1535_s24, %s102_s26  }
  0x36   : > { %p1979_p5 = scmp.lt.s32.totalorder %s1415_s16, 5  ;;  %p1980_p6 = scmp.ge.s32.totalorder %s1415_s16, 1 }
  0x38   : > { %p119_p9 = pnand %p1980_p6, %p1979_p5 }
  0x39   : > { %s124_s27 = sand.u32 (!%p119_p9), 1, %s1391_s10  }
  0x3a   : > { %122 = sbr.rel (%p119_p9) target bundleno = 856 (0x358), region = 24  ;;  %s900_s22 = sshll.u32 (!%p119_p9), %s124_s27, 3 }
  0x3b   : > { %s125_s9 = scalar_lea.sflag (!%p119_p9), [#allocation3], %s124_s27  ;;  %s128_s17 = scalar_lea.vmem (!%p119_p9), [#allocation2], %s900_s22 }
  0x41   : > { %1366 = dma.done.wait (%p1503_p7), %s125_s9, 128  }
  0x42   : > { %1368 = vsyncadd (%p1503_p7), %s125_s9, 4294967168  ;;  %s902_s18 = sshll.u32 %s1399_s12, 7  ;;  %v1580_v0 = vld [vmem:[%s128_s17] sm:$0xff]  ;;  %vm318_vm0 = vcmask 1043456   ;;  %vm221_vm1 = vcmask 31744   ;;  %s144_s25 = sand.u32 1, %s1379_s7  }
  0x43   : > { %s148_s23 = sshra.s32 %s902_s18, 7  ;;  %157 = vxpose.xlu0.b32.start.end [1/1] (short) %v1580_v0, 128  ;;  %v155_v1 = vcombine.high %v1580_v0, %v1580_v0  ;;  %s901_s3 = sshll.u32 %s144_s25, 2 }
  0x44   : > { %s903_s24 = sshll.u32 %s148_s23, 2  ;;  %s938_s21 = sshll.u32 %s1403_s13, 1 }
  0x45   : > { %s151_s26 = scalar_lea.vmem %s128_s17, %s903_s24 [#allocation2]  ;;  %781 = vmatprep.mubr.f32.mxu1 %v155_v1  ;;  %s803_s4 = sadd.s32 %s1399_s12, %s938_s21 }
  0x46   : > { %v1585_v2 = vld [vmem:[%s151_s26] sm:$0xf]  ;;  %s939_s5 = sshll.u32 %s803_s4, 6  ;;  %s146_s27 = scalar_lea.vmem [#allocation5], %s901_s3 }
  0x47   : > { %1011 = vmatprep.subr.msk.mxu0 %vm318_vm0, %v1585_v2  ;;  %s807_s22 = sshll.u32 %s146_s27, 4  ;;  %s1909_s18 = scalar_lea.hbm %s1972_s1, %s939_s5  ;;  %s1911_s22 = int_to_ptr.vmem [resolvable:$true] %s807_s22 }
  0x48   : > { %1012 = vmatpush3.msk.msra.mxu0 %vm318_vm0, %v1585_v2  ;;  %s792_s12 = scalar_lea.sflag [#allocation4], %s144_s25  ;;  %s1293_s13 = scalar_lea.vmem %s1911_s22, 64 }
  0x49   : > { %p1294_p7 = scmp.ne.s32.totalorder %s1911_s22, %s1293_s13  ;;  %p1981_p12 = scmp.ne.s32.totalorder %s1976_s28, 0 }
  0x4a   : > { %s1418_s23 = smov [#allocation5]  }
  0x4b   : > { %p1295_p2 = pnand %p1294_p7, %p1981_p12  ;;  %s1297_s24 = sshll.u32 %s1418_s23, 4  ;;  %s1298_s24 = int_to_ptr.vmem [resolvable:$false] %s1297_s24 }
  0x4c   : > { %s1299_s26 = scalar_lea.vmem %s1298_s24, 128  ;;  %p1300_p11 = scmp.lt.s32.totalorder %s1911_s22, %s1298_s24 }
  0x4d   : > { %p1296_p4 = pneg %p1295_p2  ;;  %p1301_p1 = scmp.lt.s32.totalorder %s1299_s26, %s1293_s13 }
  0x4f   : > { %p1302_p8 = por %p1301_p1, %p1300_p11 }
  0x51   : > { %p1303_p10 = pnand %p1302_p8, %p1296_p4 }
  0x80   : > { %189 = vxpose.xlu0.b32.start.end [1/1] (short) %v155_v1, 128 }
  0xc3   : > { %v173_v3 = vpop.trf.xlu0 }
  0xc4   : > { %1013 = vmatprep.mubr.msk.f32.mxu0 %vm221_vm1, %v173_v3 }
  0xc7   : > { %v174_v4 = vpop.trf.xlu0 }
  0xc8   : > { %1014 = vmatmul.mubr.msk.f32.vlgmr.msra.gmra.mrb[0].mxu0 %vm221_vm1, %v174_v4 }
  0xcb   : > { %v175_v5 = vpop.trf.xlu0 }
  0xcc   : > { %1016 = vmatprep.mubr.msk.f32.mxu0 %vm221_vm1, %v175_v5 }
  0xcf   : > { %v176_v6 = vpop.trf.xlu0 }
  0xd0   : > { %1017 = vmatmul.mubr.msk.f32.gmra.mrb[2].mxu0 %vm221_vm1, %v176_v6 }
  0xd3   : > { %v177_v7 = vpop.trf.xlu0 }
  0xd4   : > { %1019 = vmatprep.mubr.msk.f32.mxu0 %vm221_vm1, %v177_v7 }
  0xd7   : > { %v178_v8 = vpop.trf.xlu0 }
  0xd8   : > { %1020 = vmatmul.mubr.msk.f32.gmra.mrb[4].mxu0 %vm221_vm1, %v178_v8 }
  0xdb   : > { %v179_v9 = vpop.trf.xlu0 }
  0xdc   : > { %1022 = vmatprep.mubr.msk.f32.mxu0 %vm221_vm1, %v179_v9 }
  0xdf   : > { %v180_v10 = vpop.trf.xlu0 }
  0xe0   : > { %1023 = vmatmul.mubr.msk.f32.gmra.mrb[6].mxu0 %vm221_vm1, %v180_v10 }
  0xe3   : > { %v181_v11 = vpop.trf.xlu0 }
  0xe4   : > { %1025 = vmatprep.mubr.msk.f32.mxu0 %vm221_vm1, %v181_v11 }
  0xe7   : > { %v182_v12 = vpop.trf.xlu0 }
  0xe8   : > { %1026 = vmatmul.mubr.msk.f32.gmra.mrb[8].mxu0 %vm221_vm1, %v182_v12 }
  0xeb   : > { %v183_v13 = vpop.trf.xlu0 }
  0xec   : > { %1028 = vmatprep.mubr.msk.f32.mxu0 %vm221_vm1, %v183_v13 }
  0xef   : > { %v184_v14 = vpop.trf.xlu0 }
  0xf0   : > { %1029 = vmatmul.mubr.msk.f32.gmra.mrb[10].mxu0 %vm221_vm1, %v184_v14 }
  0xf3   : > { %v185_v15 = vpop.trf.xlu0 }
  0xf4   : > { %1031 = vmatprep.mubr.msk.f32.mxu0 %vm221_vm1, %v185_v15 }
  0xf7   : > { %v186_v16 = vpop.trf.xlu0 }
  0xf8   : > { %1032 = vmatmul.mubr.msk.f32.gmra.mrb[12].mxu0 %vm221_vm1, %v186_v16 }
  0xfb   : > { %v187_v17 = vpop.trf.xlu0 }
  0xfc   : > { %1034 = vmatprep.mubr.msk.f32.mxu0 %vm221_vm1, %v187_v17 }
  0xff   : > { %v188_v18 = vpop.trf.xlu0 }
 0x100   : > { %1035 = vmatmul.mubr.msk.f32.gmra.mrb[14].mxu0 %vm221_vm1, %v188_v18 }
 0x103   : > { %v205_v19 = vpop.trf.xlu0 }
 0x104   : > { %1037 = vmatprep.mubr.msk.f32.mxu0 %vm221_vm1, %v205_v19 }
 0x107   : > { %v206_v20 = vpop.trf.xlu0 }
 0x108   : > { %1038 = vmatmul.mubr.msk.f32.gmra.mrb[16].mxu0 %vm221_vm1, %v206_v20 }
 0x10b   : > { %v207_v21 = vpop.trf.xlu0 }
 0x10c   : > { %1040 = vmatprep.mubr.msk.f32.mxu0 %vm221_vm1, %v207_v21 }
 0x10f   : > { %v208_v22 = vpop.trf.xlu0 }
 0x110   : > { %1041 = vmatmul.mubr.msk.f32.gmra.mrb[18].mxu0 %vm221_vm1, %v208_v22 }
 0x113   : > { %v209_v23 = vpop.trf.xlu0 }
 0x114   : > { %1043 = vmatprep.mubr.msk.f32.mxu0 %vm221_vm1, %v209_v23 }
 0x117   : > { %v210_v24 = vpop.trf.xlu0 }
 0x118   : > { %1044 = vmatmul.mubr.msk.f32.gmra.mrb[20].mxu0 %vm221_vm1, %v210_v24 }
 0x11b   : > { %v211_v25 = vpop.trf.xlu0 }
 0x11c   : > { %1046 = vmatprep.mubr.msk.f32.mxu0 %vm221_vm1, %v211_v25 }
 0x11f   : > { %v212_v26 = vpop.trf.xlu0 }
 0x120   : > { %1047 = vmatmul.mubr.msk.f32.gmra.mrb[22].mxu0 %vm221_vm1, %v212_v26 }
 0x123   : > { %v213_v27 = vpop.trf.xlu0 }
 0x124   : > { %1049 = vmatprep.mubr.msk.f32.mxu0 %vm221_vm1, %v213_v27 }
 0x127   : > { %v214_v28 = vpop.trf.xlu0 }
 0x128   : > { %1050 = vmatmul.mubr.msk.f32.gmra.mrb[24].mxu0 %vm221_vm1, %v214_v28 }
 0x12b   : > { %v215_v29 = vpop.trf.xlu0 }
 0x12c   : > { %1052 = vmatprep.mubr.msk.f32.mxu0 %vm221_vm1, %v215_v29 }
 0x12f   : > { %v216_v30 = vpop.trf.xlu0 }
 0x130   : > { %1053 = vmatmul.mubr.msk.f32.gmra.mrb[26].mxu0 %vm221_vm1, %v216_v30 }
 0x133   : > { %v217_v31 = vpop.trf.xlu0 }
 0x134   : > { %1055 = vmatprep.mubr.msk.f32.mxu0 %vm221_vm1, %v217_v31 }
 0x137   : > { %v218_v32 = vpop.trf.xlu0 }
 0x138   : > { %1056 = vmatmul.mubr.msk.f32.gmra.mrb[28].mxu0 %vm221_vm1, %v218_v32 }
 0x13b   : > { %v219_v33 = vpop.trf.xlu0 }
 0x13c   : > { %1058 = vmatprep.mubr.msk.f32.mxu0 %vm221_vm1, %v219_v33 }
 0x13f   : > { %v220_v34 = vpop.trf.xlu0 }
 0x140   : > { %1059 = vmatmul.mubr.msk.f32.gmra.mrb[30].mxu0 %vm221_vm1, %v220_v34 }
 0x19b   : > { %v1621_v35 = vpop.f32.mrb[0].mxu0 }
 0x19c   : > { %v1623_v36 = vpop.f32.mrb[1].mxu0 }
 0x1a3   : > { %v1625_v37 = vpop.f32.mrb[2].mxu0 }
 0x1a4   : > { %v1627_v38 = vpop.f32.mrb[3].mxu0 }
 0x1ab   : > { %v1629_v39 = vpop.f32.mrb[4].mxu0 }
 0x1ac   : > { %v548_v40 = vmax.f32 %v1621_v35, %v1629_v39  ;;  %v1633_v41 = vpop.f32.mrb[5].mxu0 }
 0x1ad   : > { %v547_v42 = vmax.f32 %v1623_v36, %v1633_v41 }
 0x1b3   : > { %v1637_v43 = vpop.f32.mrb[6].mxu0 }
 0x1b4   : > { %v550_v44 = vmax.f32 %v1625_v37, %v1637_v43  ;;  %v1641_v45 = vpop.f32.mrb[7].mxu0 }
 0x1b5   : > { %v549_v46 = vmax.f32 %v1627_v38, %v1641_v45 }
 0x1bb   : > { %v1645_v47 = vpop.f32.mrb[8].mxu0 }
 0x1bc   : > { %v552_v48 = vmax.f32 %v548_v40, %v1645_v47  ;;  %v1648_v49 = vpop.f32.mrb[9].mxu0 }
 0x1bd   : > { %v551_v50 = vmax.f32 %v547_v42, %v1648_v49 }
 0x1c3   : > { %v1651_v51 = vpop.f32.mrb[10].mxu0 }
 0x1c4   : > { %v554_v52 = vmax.f32 %v550_v44, %v1651_v51  ;;  %v1654_v53 = vpop.f32.mrb[11].mxu0 }
 0x1c5   : > { %v553_v54 = vmax.f32 %v549_v46, %v1654_v53 }
 0x1cb   : > { %v1657_v55 = vpop.f32.mrb[12].mxu0 }
 0x1cc   : > { %v556_v56 = vmax.f32 %v552_v48, %v1657_v55  ;;  %v1660_v57 = vpop.f32.mrb[13].mxu0 }
 0x1cd   : > { %v555_v58 = vmax.f32 %v551_v50, %v1660_v57 }
 0x1d3   : > { %v1663_v59 = vpop.f32.mrb[14].mxu0 }
 0x1d4   : > { %v558_v60 = vmax.f32 %v554_v52, %v1663_v59  ;;  %v1666_v61 = vpop.f32.mrb[15].mxu0 }
 0x1d5   : > { %v557_v62 = vmax.f32 %v553_v54, %v1666_v61 }
 0x1db   : > { %v1669_v63 = vpop.f32.mrb[16].mxu0 }
 0x1dc   : > { %v560_v1 = vmax.f32 %v556_v56, %v1669_v63  ;;  %v1672_v3 = vpop.f32.mrb[17].mxu0 }
 0x1dd   : > { %v559_v4 = vmax.f32 %v555_v58, %v1672_v3 }
 0x1e3   : > { %v1675_v5 = vpop.f32.mrb[18].mxu0 }
 0x1e4   : > { %v562_v6 = vmax.f32 %v558_v60, %v1675_v5  ;;  %v1678_v7 = vpop.f32.mrb[19].mxu0 }
 0x1e5   : > { %v561_v8 = vmax.f32 %v557_v62, %v1678_v7 }
 0x1eb   : > { %v1681_v9 = vpop.f32.mrb[20].mxu0 }
 0x1ec   : > { %v564_v10 = vmax.f32 %v560_v1, %v1681_v9  ;;  %v1684_v11 = vpop.f32.mrb[21].mxu0 }
 0x1ed   : > { %v563_v12 = vmax.f32 %v559_v4, %v1684_v11 }
 0x1f3   : > { %v1687_v13 = vpop.f32.mrb[22].mxu0 }
 0x1f4   : > { %v566_v14 = vmax.f32 %v562_v6, %v1687_v13  ;;  %v1690_v15 = vpop.f32.mrb[23].mxu0 }
 0x1f5   : > { %v565_v16 = vmax.f32 %v561_v8, %v1690_v15 }
 0x1fb   : > { %v1693_v17 = vpop.f32.mrb[24].mxu0 }
 0x1fc   : > { %v568_v18 = vmax.f32 %v564_v10, %v1693_v17  ;;  %v1696_v19 = vpop.f32.mrb[25].mxu0 }
 0x1fd   : > { %v567_v20 = vmax.f32 %v563_v12, %v1696_v19 }
 0x203   : > { %v1699_v21 = vpop.f32.mrb[26].mxu0 }
 0x204   : > { %v570_v22 = vmax.f32 %v566_v14, %v1699_v21  ;;  %v1702_v23 = vpop.f32.mrb[27].mxu0 }
 0x205   : > { %v569_v24 = vmax.f32 %v565_v16, %v1702_v23 }
 0x20b   : > { %v1705_v25 = vpop.f32.mrb[28].mxu0 }
 0x20c   : > { %v572_v26 = vmax.f32 %v568_v18, %v1705_v25  ;;  %v1708_v27 = vpop.f32.mrb[29].mxu0 }
 0x20d   : > { %v571_v28 = vmax.f32 %v567_v20, %v1708_v27 }
 0x20f   : > { %v575_v29 = vmax.f32 %v571_v28, %v572_v26 }
 0x213   : > { %v1711_v30 = vpop.f32.mrb[30].mxu0 }
 0x214   : > { %v574_v31 = vmax.f32 %v570_v22, %v1711_v30  ;;  %v1714_v32 = vpop.f32.mrb[31].mxu0 }
 0x215   : > { %v573_v33 = vmax.f32 %v569_v24, %v1714_v32 }
 0x217   : > { %v576_v34 = vmax.f32 %v573_v33, %v574_v31 }
 0x219   : > { %v577_v40 = vmax.f32 %v575_v29, %v576_v34 }
 0x21b   : > { %v578_v42 = vrot.slane %v577_v40, 4 }
 0x21d   : > { %v579_v44 = vmax.f32 %v577_v40, %v578_v42 }
 0x21f   : > { %v580_v46 = vrot.slane %v579_v44, 2 }
 0x221   : > { %v581_v48 = vmax.f32 %v579_v44, %v580_v46 }
 0x223   : > { %v582_v50 = vrot.slane %v581_v48, 1 }
 0x225   : > { %v1717_v52 = vmax.f32 %v581_v48, %v582_v50 }
 0x227   : > { %v584_v54 = vsub.f32 %v1623_v36, %v1717_v52  ;;  %v585_v56 = vsub.f32 %v1621_v35, %v1717_v52  ;;  %v586_v58 = vsub.f32 %v1627_v38, %v1717_v52  ;;  %v587_v60 = vsub.f32 %v1625_v37, %v1717_v52 }
 0x228   : > { %v588_v62 = vsub.f32 %v1633_v41, %v1717_v52  ;;  %v589_v1 = vsub.f32 %v1629_v39, %v1717_v52  ;;  %v590_v4 = vsub.f32 %v1641_v45, %v1717_v52  ;;  %v591_v36 = vsub.f32 %v1637_v43, %v1717_v52 }
 0x229   : > { %v592_v35 = vsub.f32 %v1648_v49, %v1717_v52  ;;  %v593_v38 = vsub.f32 %v1645_v47, %v1717_v52  ;;  %v594_v37 = vsub.f32 %v1654_v53, %v1717_v52  ;;  %v595_v41 = vsub.f32 %v1651_v51, %v1717_v52 }
 0x22a   : > { %v596_v39 = vsub.f32 %v1660_v57, %v1717_v52  ;;  %v597_v45 = vsub.f32 %v1657_v55, %v1717_v52  ;;  %v598_v43 = vsub.f32 %v1666_v61, %v1717_v52  ;;  %v599_v49 = vsub.f32 %v1663_v59, %v1717_v52 }
 0x22b   : > { %v600_v47 = vsub.f32 %v1672_v3, %v1717_v52  ;;  %v601_v53 = vsub.f32 %v1669_v63, %v1717_v52  ;;  %v602_v51 = vsub.f32 %v1678_v7, %v1717_v52  ;;  %v603_v57 = vsub.f32 %v1675_v5, %v1717_v52 }
 0x22c   : > { %v604_v55 = vsub.f32 %v1684_v11, %v1717_v52  ;;  %v605_v61 = vsub.f32 %v1681_v9, %v1717_v52  ;;  %v606_v59 = vsub.f32 %v1690_v15, %v1717_v52  ;;  %v607_v3 = vsub.f32 %v1687_v13, %v1717_v52 }
 0x22d   : > { %v608_v63 = vsub.f32 %v1696_v19, %v1717_v52  ;;  %v609_v6 = vsub.f32 %v1693_v17, %v1717_v52  ;;  %v610_v5 = vsub.f32 %v1702_v23, %v1717_v52  ;;  %v611_v7 = vsub.f32 %v1699_v21, %v1717_v52 }
 0x22e   : > { %v612_v8 = vsub.f32 %v1708_v27, %v1717_v52  ;;  %v613_v10 = vsub.f32 %v1705_v25, %v1717_v52  ;;  %v614_v11 = vsub.f32 %v1714_v32, %v1717_v52  ;;  %v615_v12 = vsub.f32 %v1711_v30, %v1717_v52 }
 0x22f   : > { %v616_v14 = vmul.f32 1.442695, %v584_v54  ;;  %v618_v16 = vmul.f32 1.442695, %v585_v56  ;;  %v620_v18 = vmul.f32 1.442695, %v586_v58 }
 0x230   : > { %v622_v20 = vmul.f32 1.442695, %v587_v60  ;;  %v624_v22 = vmul.f32 1.442695, %v588_v62  ;;  %v626_v24 = vmul.f32 1.442695, %v589_v1 }
 0x231   : > { %1197 = vpow2.f32 %v616_v14  ;;  %v628_v26 = vmul.f32 1.442695, %v590_v4  ;;  %v630_v28 = vmul.f32 1.442695, %v591_v36  ;;  %v632_v29 = vmul.f32 1.442695, %v592_v35 }
 0x232   : > { %1199 = vpow2.f32 %v618_v16  ;;  %v634_v31 = vmul.f32 1.442695, %v593_v38  ;;  %v636_v33 = vmul.f32 1.442695, %v594_v37  ;;  %v638_v34 = vmul.f32 1.442695, %v595_v41 }
 0x233   : > { %1201 = vpow2.f32 %v620_v18  ;;  %v640_v40 = vmul.f32 1.442695, %v596_v39  ;;  %v642_v42 = vmul.f32 1.442695, %v597_v45  ;;  %v644_v46 = vmul.f32 1.442695, %v598_v43 }
 0x234   : > { %1203 = vpow2.f32 %v622_v20  ;;  %v646_v50 = vmul.f32 1.442695, %v599_v49  ;;  %v648_v56 = vmul.f32 1.442695, %v600_v47  ;;  %v650_v1 = vmul.f32 1.442695, %v601_v53 }
 0x235   : > { %1205 = vpow2.f32 %v624_v22  ;;  %v652_v36 = vmul.f32 1.442695, %v602_v51  ;;  %v654_v41 = vmul.f32 1.442695, %v603_v57  ;;  %v656_v45 = vmul.f32 1.442695, %v604_v55 }
 0x236   : > { %1207 = vpow2.f32 %v626_v24  ;;  %v658_v53 = vmul.f32 1.442695, %v605_v61  ;;  %v660_v57 = vmul.f32 1.442695, %v606_v59  ;;  %v662_v9 = vmul.f32 1.442695, %v607_v3 }
 0x237   : > { %1209 = vpow2.f32 %v628_v26  ;;  %v664_v15 = vmul.f32 1.442695, %v608_v63  ;;  %v666_v13 = vmul.f32 1.442695, %v609_v6  ;;  %v668_v19 = vmul.f32 1.442695, %v610_v5 }
 0x238   : > { %1211 = vpow2.f32 %v630_v28  ;;  %v670_v17 = vmul.f32 1.442695, %v611_v7  ;;  %v672_v23 = vmul.f32 1.442695, %v612_v8  ;;  %v674_v21 = vmul.f32 1.442695, %v613_v10 }
 0x239   : > { %1213 = vpow2.f32 %v632_v29  ;;  %v676_v29 = vmul.f32 1.442695, %v614_v11 }
 0x23a   : > { %1215 = vpow2.f32 %v634_v31 }
 0x23b   : > { %v1783_v44 = vpop.eup %1197  ;;  %1217 = vpow2.f32 %v636_v33  ;;  %v678_v33 = vmul.f32 1.442695, %v615_v12 }
 0x23c   : > { %v1785_v48 = vpop.eup %1199  ;;  %1219 = vpow2.f32 %v638_v34 }
 0x23d   : > { %v1787_v54 = vpop.eup %1201  ;;  %1221 = vpow2.f32 %v640_v40  ;;  %v680_v58 = vadd.f32 %v1785_v48, %v1783_v44  ;;  %v1063_v60 = vpack.c.bf16 %v1785_v48, %v1783_v44 }
 0x23e   : > { %v1793_v62 = vpop.eup %1203  ;;  %1223 = vpow2.f32 %v642_v42 }
 0x23f   : > { %v1795_v4 = vpop.eup %1205  ;;  %1225 = vpow2.f32 %v644_v46  ;;  %v681_v35 = vadd.f32 %v1787_v54, %v680_v58  ;;  %v1067_v38 = vpack.c.bf16 %v1793_v62, %v1787_v54 }
 0x240   : > { %v1800_v37 = vpop.eup %1207  ;;  %1227 = vpow2.f32 %v646_v50 }
 0x241   : > { %v1802_v39 = vpop.eup %1209  ;;  %1229 = vpow2.f32 %v648_v56  ;;  %v682_v43 = vadd.f32 %v1793_v62, %v681_v35  ;;  %v1071_v49 = vpack.c.bf16 %v1800_v37, %v1795_v4 }
 0x242   : > { %v1807_v47 = vpop.eup %1211  ;;  %1231 = vpow2.f32 %v650_v1 }
 0x243   : > { %v1812_v51 = vpop.eup %1213  ;;  %1233 = vpow2.f32 %v652_v36  ;;  %v683_v55 = vadd.f32 %v1795_v4, %v682_v43  ;;  %v1075_v14 = vpack.c.bf16 %v1807_v47, %v1802_v39 }
 0x244   : > { %v1820_v16 = vpop.eup %1215  ;;  %1235 = vpow2.f32 %v654_v41 }
 0x245   : > { %v1825_v61 = vpop.eup %1217  ;;  %1237 = vpow2.f32 %v656_v45  ;;  %v684_v59 = vadd.f32 %v1800_v37, %v683_v55  ;;  %v1079_v18 = vpack.c.bf16 %v1820_v16, %v1812_v51 }
 0x246   : > { %v1833_v20 = vpop.eup %1219  ;;  %1239 = vpow2.f32 %v658_v53 }
 0x247   : > { %v1838_v3 = vpop.eup %1221  ;;  %1241 = vpow2.f32 %v660_v57  ;;  %v685_v63 = vadd.f32 %v1802_v39, %v684_v59  ;;  %v1083_v22 = vpack.c.bf16 %v1833_v20, %v1825_v61 }
 0x248   : > { %v1846_v24 = vpop.eup %1223  ;;  %1243 = vpow2.f32 %v662_v9 }
 0x249   : > { %v1851_v6 = vpop.eup %1225  ;;  %1245 = vpow2.f32 %v664_v15  ;;  %v686_v5 = vadd.f32 %v1807_v47, %v685_v63  ;;  %v1087_v26 = vpack.c.bf16 %v1846_v24, %v1838_v3 }
 0x24a   : > { %v1859_v28 = vpop.eup %1227  ;;  %1247 = vpow2.f32 %v666_v13 }
 0x24b   : > { %v1230_v7 = vpop.eup %1229  ;;  %1249 = vpow2.f32 %v668_v19  ;;  %v687_v27 = vadd.f32 %v1812_v51, %v686_v5  ;;  %v1091_v8 = vpack.c.bf16 %v1859_v28, %v1851_v6 }
 0x24c   : > { %v1232_v31 = vpop.eup %1231  ;;  %1251 = vpow2.f32 %v670_v17 }
 0x24d   : > { %v1234_v34 = vpop.eup %1233  ;;  %1253 = vpow2.f32 %v672_v23  ;;  %v688_v25 = vadd.f32 %v1820_v16, %v687_v27  ;;  %v1061_v10 = vpack.c.bf16 %v1232_v31, %v1230_v7 }
 0x24e   : > { %v1236_v40 = vpop.eup %1235  ;;  %1255 = vpow2.f32 %v674_v21 }
 0x24f   : > { %v1238_v32 = vpop.eup %1237  ;;  %1257 = vpow2.f32 %v676_v29  ;;  %v689_v11 = vadd.f32 %v1825_v61, %v688_v25  ;;  %1062 = vmatprep.subr.bf16.mxu1 %v1061_v10  ;;  %v1065_v42 = vpack.c.bf16 %v1236_v40, %v1234_v34 }
 0x250   : > { %v1240_v46 = vpop.eup %1239  ;;  %1259 = vpow2.f32 %v678_v33  ;;  %1064 = vmatpush3.bf16.msra.mxu1 %v1063_v60 }
 0x251   : > { %v1242_v30 = vpop.eup %1241  ;;  %v690_v52 = vadd.f32 %v1833_v20, %v689_v11  ;;  %1066 = vmatprep.subr.bf16.mxu1 %v1065_v42  ;;  %v1069_v12 = vpack.c.bf16 %v1240_v46, %v1238_v32 }
 0x252   : > { %v1244_v50 = vpop.eup %1243 }
 0x253   : > { %v1246_v56 = vpop.eup %1245  ;;  %v691_v58 = vadd.f32 %v1838_v3, %v690_v52  ;;  %v1073_v1 = vpack.c.bf16 %v1244_v50, %v1242_v30 }
 0x254   : > { %v1248_v36 = vpop.eup %1247  ;;  %1068 = vmatpush3.bf16.msra.mxu1 %v1067_v38 }
 0x255   : > { %v1250_v35 = vpop.eup %1249  ;;  %v692_v41 = vadd.f32 %v1846_v24, %v691_v58  ;;  %1070 = vmatprep.subr.bf16.mxu1 %v1069_v12  ;;  %v1077_v44 = vpack.c.bf16 %v1248_v36, %v1246_v56 }
 0x256   : > { %v1252_v48 = vpop.eup %1251 }
 0x257   : > { %v1254_v60 = vpop.eup %1253  ;;  %v693_v45 = vadd.f32 %v1851_v6, %v692_v41  ;;  %v1081_v43 = vpack.c.bf16 %v1252_v48, %v1250_v35 }
 0x258   : > { %v1256_v53 = vpop.eup %1255  ;;  %1072 = vmatpush3.bf16.msra.mxu1 %v1071_v49 }
 0x259   : > { %v1258_v57 = vpop.eup %1257  ;;  %v694_v55 = vadd.f32 %v1859_v28, %v693_v45  ;;  %1074 = vmatprep.subr.bf16.mxu1 %v1073_v1  ;;  %v1085_v54 = vpack.c.bf16 %v1256_v53, %v1254_v60 }
 0x25a   : > { %v1260_v62 = vpop.eup %1259 }
 0x25b   : > { %v695_v38 = vadd.f32 %v1230_v7, %v694_v55  ;;  %v1089_v9 = vpack.c.bf16 %v1260_v62, %v1258_v57 }
 0x25c   : > { %1076 = vmatpush3.bf16.msra.mxu1 %v1075_v14 }
 0x25d   : > { %v696_v15 = vadd.f32 %v1232_v31, %v695_v38  ;;  %1078 = vmatprep.subr.bf16.mxu1 %v1077_v44 }
 0x25f   : > { %v697_v59 = vadd.f32 %v1234_v34, %v696_v15 }
 0x260   : > { %1080 = vmatpush3.bf16.msra.mxu1 %v1079_v18 }
 0x261   : > { %v698_v4 = vadd.f32 %v1236_v40, %v697_v59  ;;  %1082 = vmatprep.subr.bf16.mxu1 %v1081_v43 }
 0x263   : > { %v699_v37 = vadd.f32 %v1238_v32, %v698_v4 }
 0x264   : > { %1084 = vmatpush3.bf16.msra.mxu1 %v1083_v22 }
 0x265   : > { %v700_v49 = vadd.f32 %v1240_v46, %v699_v37  ;;  %1086 = vmatprep.subr.bf16.mxu1 %v1085_v54 }
 0x267   : > { %v701_v13 = vadd.f32 %v1242_v30, %v700_v49 }
 0x268   : > { %1088 = vmatpush3.bf16.msra.mxu1 %v1087_v26 }
 0x269   : > { %v702_v39 = vadd.f32 %v1244_v50, %v701_v13  ;;  %1090 = vmatprep.subr.bf16.mxu1 %v1089_v9 }
 0x26b   : > { %v703_v47 = vadd.f32 %v1246_v56, %v702_v39 }
 0x26c   : > { %1092 = vmatpush3.bf16.msra.mxu1 %v1091_v8 }
 0x26d   : > { %v704_v51 = vadd.f32 %v1248_v36, %v703_v47 }
 0x26f   : > { %v705_v14 = vadd.f32 %v1250_v35, %v704_v51  ;;  %782 = vmatmul.mubr.f32.vlgmr.msra.gmra.mrb[0].mxu1 %v1580_v0 }
 0x271   : > { %v706_v16 = vadd.f32 %v1252_v48, %v705_v14 }
 0x273   : > { %v707_v61 = vadd.f32 %v1254_v60, %v706_v16 }
 0x275   : > { %v708_v18 = vadd.f32 %v1256_v53, %v707_v61 }
 0x277   : > { %v709_v20 = vadd.f32 %v1258_v57, %v708_v18 }
 0x279   : > { %v710_v19 = vadd.f32 %v1260_v62, %v709_v20 }
 0x27b   : > { %v711_v63 = vrot.slane %v710_v19, 4 }
 0x27d   : > { %v712_v22 = vadd.f32 %v711_v63, %v710_v19 }
 0x27f   : > { %v713_v3 = vrot.slane %v712_v22, 2 }
 0x281   : > { %v714_v24 = vadd.f32 %v713_v3, %v712_v22 }
 0x283   : > { %v715_v17 = vrot.slane %v714_v24, 1 }
 0x285   : > { %v716_v6 = vadd.f32 %v715_v17, %v714_v24 }
 0x287   : > { %1261 = vrcp.f32 %v716_v6 }
 0x291   : > { %v1262_v26 = vpop.eup %1261 }
 0x342   : > { %v1008_v23 = vpop.f32.mrb[0].mxu1 }
 0x343   : > { %v1009_v0 = vpop.f32.mrb[1].mxu1 }
 0x344   : > { %v1010_v5 = vadd.f32 %v1009_v0, %v1008_v23 }
 0x346   : > { %v788_v28 = vmul.f32 %v1262_v26, %v1010_v5 }
 0x348   : > { %v789_v21 = vadd.f32 %v788_v28, %v1585_v2 }
 0x34a   : > { %790 = vst [vmem:[%s146_s27] sm:$0xf] %v789_v21 }
 0x34b   : > { %1306 = shalt.err (!%p1303_p10)
}
 0x34c   : > { %s1307_s25 = scalar_lea.hbm %s1909_s18, 64  ;;  %s1311_s4 = scalar_lea.hbm %s1972_s1, 256 }
 0x34d   : > { %p1308_p3 = scmp.ne.s32.totalorder %s1909_s18, %s1307_s25  ;;  %p1312_p5 = scmp.lt.u32.totalorder %s1909_s18, %s1972_s1 }
 0x34e   : > { %p1313_p6 = scmp.lt.u32.totalorder %s1311_s4, %s1307_s25  ;;  %p1315_p7 = scmp.lt.u32.totalorder %s1307_s25, %s1909_s18 }
 0x34f   : > { %p1309_p13 = pnand %p1308_p3, %p1981_p12 }
 0x350   : > { %p1314_p9 = por %p1313_p6, %p1312_p5 }
 0x351   : > { %p1310_p0 = pneg %p1309_p13 }
 0x352   : > { %p1316_p2 = por %p1315_p7, %p1314_p9 }
 0x354   : > { %p1317_p4 = pnand %p1316_p2, %p1310_p0 }
 0x356   : > { %1320 = shalt.err (!%p1317_p4)
}
 0x357   : > { %1095 = dma.vmem_to_hbm [thread:$0]  (%p1981_p12), %s1911_s22, 64, %s1909_s18, %s792_s12  }
 0x358 PF: > { %p1106_p11 = scmp.ge.s32.totalorder %s1415_s16, 2  ;;  %s819_s9 = sand.u32 1, %s1375_s6  }
 0x359   : > { %p1982_p1 = scmp.ne.s32.totalorder %s1977_s2, 0  ;;  %s820_s17 = scalar_lea.sflag [#allocation4], %s819_s9 }
 0x35b   : > { %p1102_p8 = pnand %p1106_p11, %p1982_p1 }
 0x35d   : > { %1370 = dma.done.wait (!%p1102_p8), %s820_s17, 64  }
 0x35e   : > { %1372 = vsyncadd (!%p1102_p8), %s820_s17, 4294967232  ;;  %s17_s16 = sadd.s32 1, %s1415_s16   ;;  %s1983_s6 = smov %s1379_s7 }
 0x35f   : > { %p14_p10 = scmp.ge.s32.totalorder %s17_s16, 6   ;;  %s1984_s7 = smov %s1383_s8 }
 0x360   : > { %s1985_s8 = smov %s1519_s30  ;;  %s1986_s9 = smov %s1391_s10 }
 0x361   : > { %s1987_s10 = smov %s1395_s11  ;;  %s1988_s11 = smov %s1516_s29 }
 0x362   : > { %s1989_s12 = smov %s1407_s14  ;;  %s1990_s13 = smov %s1411_s15 }
 0x363   : > { %s1991_s14 = smov %s1994_s19  ;;  %s1992_s15 = smov %s1998_s20 }
 0x364   :  { %16 = sbr.rel (!%p14_p10) target bundleno = 9 (0x9), region = 70 }
 0x36b   :  { %825 = vsyncpa [#allocation3], 1 }
 0x36c   :  { %827 = vsyncpa [#allocation3 + $0x1], 1 }
 0x36d   :  { %828 = vsyncpa [#allocation4], 1 }
 0x36e   :  { %830 = vsyncpa [#allocation4 + $0x1], 1 }

</bundles_post_ra>
